<compile_context>
chip_gen: v6e
topology: v6e:2x2x1
jax: 0.10.0
libtpu: 0.0.40
codegen_flags: <defaults>
</compile_context>

<pallas_src>
import functools

import jax
import jax.numpy as jnp
from jax.experimental import pallas as pl
from jax.experimental.pallas import tpu as pltpu


def _round_up(x, m):
    return ((x + m - 1) // m) * m


def _pick_h_chunk(H, target=512):
    """Largest 128-multiple divisor of H that is <= target; else the full H."""
    if H <= target:
        return H
    c = (target // 128) * 128
    while c >= 128:
        if H % c == 0:
            return c
        c -= 128
    return H


def _tpu_tiling_defaults():
    """(tile_m, vmem_limit_bytes) per TPU generation (v7x has 64 MiB VMEM/TC)."""
    vmem_bytes = None
    try:
        vmem_bytes = int(pltpu.get_tpu_info().vmem_capacity_bytes)
    except Exception:
        vmem_bytes = None
    if vmem_bytes is None:
        try:
            kind = jax.devices()[0].device_kind.lower()
        except Exception:
            kind = ""
        vmem_bytes = (64 << 20) if "v7" in kind else (128 << 20)
    if vmem_bytes <= (64 << 20):          # v7x
        return 256, 40 * 1024 * 1024
    return 512, 96 * 1024 * 1024          # v5e / v6e (128 MiB physical VMEM)


def _resident_spec(shape):
    """BlockSpec for an operand whose block never changes across the grid.

    Single-buffered (fetched once, no double-buffer) when the installed JAX
    supports per-operand pipeline_mode; falls back to the default otherwise.
    """
    index_map = lambda i: (0,) * len(shape)
    if hasattr(pl, "Buffered"):
        try:
            return pl.BlockSpec(shape, index_map, pipeline_mode=pl.Buffered(1))
        except TypeError:
            pass
    return pl.BlockSpec(shape, index_map)


def _head_kernel(x_ref, w1_ref, b1_ref, w2_ref, b2_ref, o_ref, *, h_chunk, n_chunks):
    # x: (tile_m, H) bf16            (streamed, already bf16 -> no in-kernel cast)
    # w1: (H, H) bf16,  b1: (1, H) f32
    # w2: (H, L_pad) bf16, b2: (1, L_pad) f32
    # o:  (tile_m, L_pad) bf16       (lane-dense 128-wide store)
    x = x_ref[...]
    acc = jnp.zeros((x_ref.shape[0], o_ref.shape[1]), jnp.float32)
    # Fused two-GEMM pipeline over H chunks: never materialize the full
    # (tile_m, H) f32 intermediate (avoids VMEM spills for large H).
    for c in range(n_chunks):
        lo = c * h_chunk
        h = jnp.dot(x, w1_ref[:, lo:lo + h_chunk],
                    preferred_element_type=jnp.float32)          # MXU, f32 acc
        h = jnp.tanh(h + b1_ref[:, lo:lo + h_chunk])             # f32 bias + EUP tanh
        acc = acc + jnp.dot(h.astype(jnp.bfloat16),
                            w2_ref[lo:lo + h_chunk, :],
                            preferred_element_type=jnp.float32)  # MXU, f32 acc
    o_ref[...] = (acc + b2_ref[...]).astype(o_ref.dtype)


def model_head_forward(features, w1, b1, w2, b2, *, force_pallas=False):
    """features: (B, S, H); w1: (H, H); b1: (H,); w2: (H, L); b2: (L,) -> (B, S, L)."""
    B, S, H = features.shape
    L = w2.shape[1]
    M = B * S

    # Tiny problems: one grid step is dominated by fixed overhead -> let XLA fuse.
    if not force_pallas and M * H < (1 << 18):
        return (jnp.tanh(features @ w1 + b1) @ w2 + b2).astype(features.dtype)

    # Lane-dense output: pad num_labels up to a multiple of 128 (zero-filled).
    L_pad = _round_up(max(L, 128), 128)

    tile_m, vmem_limit = _tpu_tiling_defaults()
    # Guarantee >= 2 grid steps so ("parallel",) splits across both TensorCores.
    tile_m = max(8, min(tile_m, _round_up(pl.cdiv(M, 2), 8)))
    grid = (pl.cdiv(M, tile_m),)  # ragged tail block is clipped by Pallas (no jnp.pad)

    # Stream x in bf16 (x is the only streamed operand -> halves HBM read bytes).
    # TODO(synk): ideally the upstream producer emits bf16 features so this cast fuses away.
    x2d = features.reshape(M, H)
    if x2d.dtype != jnp.bfloat16:
        x2d = x2d.astype(jnp.bfloat16)

    # Resident bf16 MXU weights; padded W2 columns / b2 lanes are zero-filled.
    w1_bf = w1.astype(jnp.bfloat16)
    w2_bf = jnp.zeros((H, L_pad), jnp.bfloat16).at[:, :L].set(w2.astype(jnp.bfloat16))
    b1_2d = b1.reshape(1, H).astype(jnp.float32)
    b2_2d = jnp.zeros((1, L_pad), jnp.float32).at[:, :L].set(b2.astype(jnp.float32))

    h_chunk = _pick_h_chunk(H)
    kernel = functools.partial(_head_kernel, h_chunk=h_chunk, n_chunks=H // h_chunk)

    out2d = pl.pallas_call(
        kernel,
        out_shape=jax.ShapeDtypeStruct((M, L_pad), jnp.bfloat16),  # bf16 slab write-back
        grid=grid,
        in_specs=[
            pl.BlockSpec((tile_m, H), lambda i: (i, 0)),   # x tile, pipelined over M
            _resident_spec((H, H)),                        # W1 (fetched once)
            _resident_spec((1, H)),                        # b1
            _resident_spec((H, L_pad)),                    # W2 (lane-padded)
            _resident_spec((1, L_pad)),                    # b2 (lane-padded)
        ],
        out_specs=pl.BlockSpec((tile_m, L_pad), lambda i: (i, 0)),
        compiler_params=pltpu.CompilerParams(
            dimension_semantics=("parallel",),             # megacore split on v7x
            vmem_limit_bytes=vmem_limit,
        ),
    )(x2d, w1_bf, b1_2d, w2_bf, b2_2d)

    # Slice off lane padding; return in the caller's dtype (padded cols are exact zeros).
    return out2d[:M, :L].astype(features.dtype).reshape(B, S, L)


def model_head_reference(features, w1, b1, w2, b2):
    h = jnp.tanh(features @ w1 + b1)
    return h @ w2 + b2


if __name__ == "__main__":
    # Small shapes consistent with the module: batch=2, seq=8, hidden=32, labels=4.
    B, S, H, L = 2, 8, 32, 4
    key = jax.random.PRNGKey(0)
    kx, kw1, kb1, kw2, kb2 = jax.random.split(key, 5)

    features = jax.random.normal(kx, (B, S, H), dtype=jnp.float32)
    # PyTorch nn.Linear stores weights as (out, in); here they are pre-transposed (in, out).
    w1 = jax.random.normal(kw1, (H, H), dtype=jnp.float32) * 0.05
    b1 = jax.random.normal(kb1, (H,), dtype=jnp.float32) * 0.01
    w2 = jax.random.normal(kw2, (H, L), dtype=jnp.float32) * 0.05
    b2 = jax.random.normal(kb2, (L,), dtype=jnp.float32) * 0.01

    # Force the Pallas path so the kernel itself is exercised at demo scale.
    out = model_head_forward(features, w1, b1, w2, b2, force_pallas=True)
    out = jax.block_until_ready(out)

    ref = model_head_reference(features, w1, b1, w2, b2)
    assert out.shape == (B, S, L)
    # bf16 streamed x / weights / output slab (f32 MXU accumulation) -> loosened tolerance.
    assert jnp.allclose(out, ref, atol=2e-2, rtol=2e-2), float(jnp.max(jnp.abs(out - ref)))

    print("KERNEL_OK")
</pallas_src>

<mosaic_0001>
module attributes {stable_mosaic.version = 11 : i64} {
  func.func @_head_kernel(%arg0: i32, %arg1: memref<8x32xbf16, #tpu.memory_space<vmem>>, %arg2: memref<32x32xbf16, #tpu.memory_space<vmem>>, %arg3: memref<1x32xf32, #tpu.memory_space<vmem>>, %arg4: memref<32x128xbf16, #tpu.memory_space<vmem>>, %arg5: memref<1x128xf32, #tpu.memory_space<vmem>>, %arg6: memref<8x128xbf16, #tpu.memory_space<vmem>>) attributes {dimension_semantics = [#tpu.dimension_semantics<parallel>], iteration_bounds = array<i64: 2>, scalar_prefetch = 0 : i64, scratch_operands = 0 : i64, tpu.core_type = #tpu.core_type<tc>, window_params = [{transform_indices = @transform_0, window_bounds = array<i64: 8, 32>}, {pipeline_mode = #tpu.pipeline_mode<synchronous>, transform_indices = @transform_1, window_bounds = array<i64: 32, 32>}, {pipeline_mode = #tpu.pipeline_mode<synchronous>, transform_indices = @transform_2, window_bounds = array<i64: 1, 32>}, {pipeline_mode = #tpu.pipeline_mode<synchronous>, transform_indices = @transform_3, window_bounds = array<i64: 32, 128>}, {pipeline_mode = #tpu.pipeline_mode<synchronous>, transform_indices = @transform_4, window_bounds = array<i64: 1, 128>}, {transform_indices = @transform_5, window_bounds = array<i64: 8, 128>}]} {
    %c0 = arith.constant 0 : index
    %c0_0 = arith.constant 0 : index
    %0 = vector.load %arg1[%c0, %c0_0] : memref<8x32xbf16, #tpu.memory_space<vmem>>, vector<8x32xbf16>
    %cst = arith.constant 0.000000e+00 : f32
    %1 = vector.broadcast %cst : f32 to vector<8x128xf32>
    %c0_1 = arith.constant 0 : index
    %c0_2 = arith.constant 0 : index
    %2 = vector.load %arg2[%c0_1, %c0_2] : memref<32x32xbf16, #tpu.memory_space<vmem>>, vector<32x32xbf16>
    %cst_3 = arith.constant dense<0.000000e+00> : vector<8x32xf32>
    %3 = tpu.matmul %0, %2, %cst_3 {dimension_numbers = #tpu.dot_dimension_numbers<[1], [0], [0], [1], [0, 0, 1, 1], [], []>} : vector<8x32xbf16>, vector<32x32xbf16>, vector<8x32xf32> -> vector<8x32xf32>
    %c0_4 = arith.constant 0 : index
    %c0_5 = arith.constant 0 : index
    %4 = vector.load %arg3[%c0_4, %c0_5] : memref<1x32xf32, #tpu.memory_space<vmem>>, vector<1x32xf32>
    %5 = vector.broadcast %4 : vector<1x32xf32> to vector<8x32xf32>
    %6 = arith.addf %3, %5 : vector<8x32xf32>
    %7 = math.tanh %6 : vector<8x32xf32>
    %8 = arith.truncf %7 : vector<8x32xf32> to vector<8x32xbf16>
    %c0_6 = arith.constant 0 : index
    %c0_7 = arith.constant 0 : index
    %9 = vector.load %arg4[%c0_6, %c0_7] : memref<32x128xbf16, #tpu.memory_space<vmem>>, vector<32x128xbf16>
    %cst_8 = arith.constant dense<0.000000e+00> : vector<8x128xf32>
    %10 = tpu.matmul %8, %9, %cst_8 {dimension_numbers = #tpu.dot_dimension_numbers<[1], [0], [0], [1], [0, 0, 1, 1], [], []>} : vector<8x32xbf16>, vector<32x128xbf16>, vector<8x128xf32> -> vector<8x128xf32>
    %11 = arith.addf %1, %10 : vector<8x128xf32>
    %c0_9 = arith.constant 0 : index
    %c0_10 = arith.constant 0 : index
    %12 = vector.load %arg5[%c0_9, %c0_10] : memref<1x128xf32, #tpu.memory_space<vmem>>, vector<1x128xf32>
    %13 = vector.broadcast %12 : vector<1x128xf32> to vector<8x128xf32>
    %14 = arith.addf %11, %13 : vector<8x128xf32>
    %15 = arith.truncf %14 : vector<8x128xf32> to vector<8x128xbf16>
    %c0_11 = arith.constant 0 : index
    %c0_12 = arith.constant 0 : index
    %16 = vector.load %arg6[%c0_11, %c0_12] : memref<8x128xbf16, #tpu.memory_space<vmem>>, vector<8x128xbf16>
    tpu.vector_store %arg6[%c0_11, %c0_12], %15 {strides = array<i32>} : memref<8x128xbf16, #tpu.memory_space<vmem>>, vector<8x128xbf16>,
    return
  }
  func.func @transform_0(%arg0: i32) -> (i32, i32) {
    %c0_i32 = arith.constant 0 : i32
    %c0_i32_0 = arith.constant 0 : i32
    return %arg0, %c0_i32 : i32, i32
  }
  func.func @transform_1(%arg0: i32) -> (i32, i32) {
    %c0_i32 = arith.constant 0 : i32
    %c0_i32_0 = arith.constant 0 : i32
    %c0_i32_1 = arith.constant 0 : i32
    return %c0_i32, %c0_i32_0 : i32, i32
  }
  func.func @transform_2(%arg0: i32) -> (i32, i32) {
    %c0_i32 = arith.constant 0 : i32
    %c0_i32_0 = arith.constant 0 : i32
    %c0_i32_1 = arith.constant 0 : i32
    return %c0_i32, %c0_i32_0 : i32, i32
  }
  func.func @transform_3(%arg0: i32) -> (i32, i32) {
    %c0_i32 = arith.constant 0 : i32
    %c0_i32_0 = arith.constant 0 : i32
    %c0_i32_1 = arith.constant 0 : i32
    return %c0_i32, %c0_i32_0 : i32, i32
  }
  func.func @transform_4(%arg0: i32) -> (i32, i32) {
    %c0_i32 = arith.constant 0 : i32
    %c0_i32_0 = arith.constant 0 : i32
    %c0_i32_1 = arith.constant 0 : i32
    return %c0_i32, %c0_i32_0 : i32, i32
  }
  func.func @transform_5(%arg0: i32) -> (i32, i32) {
    %c0_i32 = arith.constant 0 : i32
    %c0_i32_0 = arith.constant 0 : i32
    return %arg0, %c0_i32 : i32, i32
  }
}

</mosaic_0001>

<bundles_post_ra>
// kernel: tpu_custom_call.1
= control target key start
LH: loop header
LB: loop body
LE: loop exit
PB: predicated region body
PF: predicated region fallthrough
CT: control target
= control target key end

     0   :  { %10 = vsyncpa [#allocation3], 0  ;;  %s1011_s0 = inlined_call_operand.hbm [shape: bf16[16,32], index: 0, kind: input, shape index: {}]   ;;  %s1012_s1 = inlined_call_operand.hbm [shape: bf16[32,32], index: 1, kind: input, shape index: {}]   ;;  %s1013_s2 = inlined_call_operand.vmem [shape: f32[1,32], index: 2, kind: input, shape index: {}]   ;;  %s1014_s3 = inlined_call_operand.hbm [shape: bf16[32,128], index: 3, kind: input, shape index: {}]   ;;  %s1015_s4 = inlined_call_operand.vmem [shape: f32[1,128], index: 4, kind: input, shape index: {}]   ;;  %s1016_s5 = inlined_call_operand.hbm [shape: bf16[16,128], index: 5, kind: output, shape index: {}]  }
   0x1   :  { %12 = vsyncpa [#allocation3 + $0x1], 0 }
   0x2   :  { %13 = vsyncpa [#allocation6], 0 }
   0x3   :  { %14 = vsyncpa [#allocation4], 0 }
   0x4   :  { %16 = vsyncpa [#allocation4 + $0x1], 0  ;;  %s822_s18 = smov 0   ;;  %s824_s19 = smov 0  }
   0x5   :  { %s826_s20 = smov 0   ;;  %s828_s21 = smov 0  }
   0x6 LB: > { %s843_s22 = sadd.s32 4294967295, %s782_s21   ;;  %s511_s23 = sadd.s32 4294967294, %s782_s21   ;;  %s782_s21 = sphi %s828_s21, %s1038_s21   ;;  %s778_s20 = sphi %s826_s20, %s1037_s20   ;;  %s774_s19 = sphi %s824_s19, %s1036_s19   ;;  %s770_s18 = sphi %s822_s18, %s1035_s18  }
   0x7   : > { %p42_p0 = scmp.ne.s32.totalorder %s774_s19, %s770_s18  ;;  %p1017_p1 = scmp.eq.s32.totalorder %s843_s22, 0 }
   0x8   : > { %p156_p3 = scmp.eq.s32.totalorder %s511_s23, 1  ;;  %p512_p5 = scmp.ge.s32.totalorder %s782_s21, 1 }
   0x9   : > { %p852_p4 = por %p1017_p1, %p42_p0  ;;  %p163_p7 = scmp.lt.s32.totalorder %s782_s21, 3 }
   0xa   : > { %p857_p6 = por %p156_p3, %p42_p0  ;;  %s784_s27 = smov [#allocation5]  }
   0xb   : > { %s1021_s24 = scalar_select %p852_p4, 1, 0 }
   0xc   : > { %s1022_s25 = scalar_select %p857_p6, 1, 0 }
   0xd   : > { %p862_p8 = pnand %p512_p5, %p163_p7  ;;  %s175_s28 = sshll.u32 %s784_s27, 4  ;;  %s176_s28 = int_to_ptr.vmem [resolvable:$true] %s175_s28 }
   0xe   : > { %s785_s30 = smov [#allocation7]   ;;  %s645_s7 = scalar_lea.vmem %s176_s28, 256 }
   0xf   : > { %s1023_s26 = scalar_select %p862_p8, 1, 0 }
  0x10   : > { %p569_p9 = pneg %p862_p8  ;;  %s191_s6 = sshll.u32 %s785_s30, 4  ;;  %s192_s6 = int_to_ptr.vmem [resolvable:$true] %s191_s6 }
  0x11   : > { %p646_p13 = scmp.ne.s32.totalorder %s176_s28, %s645_s7  ;;  %p653_p5 = scmp.lt.s32.totalorder %s176_s28, %s176_s28 }
  0x12   : > { %p871_p11 = pnand %p569_p9, %p1017_p1  ;;  %p654_p7 = scmp.lt.s32.totalorder %s645_s7, %s645_s7 }
  0x14   : > { %p636_p12 = pneg %p871_p11  ;;  %p655_p10 = por %p654_p7, %p653_p5 }
  0x16   : > { %p648_p0 = pnand %p646_p13, %p636_p12 }
  0x18   : > { %p649_p3 = pneg %p648_p0 }
  0x1a   : > { %p656_p9 = pnand %p655_p10, %p649_p3 }
  0x1c   : > { %659 = shalt.err (!%p656_p9)
}
  0x1d   : > { %s786_s8 = smov 64   ;;  %s787_s9 = smov 4  }
  0x1e   : > { %572 = dma.hbm_to_vmem [thread:$0]  (!%p871_p11), %s1012_s1, 256, %s176_s28, [#allocation6], %s786_s8, %s786_s8, %s787_s9  }
  0x1f   : > { %s671_s12 = scalar_lea.vmem %s192_s6, 256  ;;  %p679_p2 = scmp.lt.s32.totalorder %s192_s6, %s192_s6 }
  0x20   : > { %p672_p1 = scmp.ne.s32.totalorder %s192_s6, %s671_s12  ;;  %p680_p6 = scmp.lt.s32.totalorder %s671_s12, %s671_s12 }
  0x22   : > { %p674_p13 = pnand %p672_p1, %p636_p12  ;;  %p681_p5 = por %p680_p6, %p679_p2 }
  0x24   : > { %p675_p0 = pneg %p674_p13 }
  0x26   : > { %p682_p10 = pnand %p681_p5, %p675_p0 }
  0x28   : > { %685 = shalt.err (!%p682_p10)
}
  0x29   : > { %575 = dma.hbm_to_vmem [thread:$0]  (!%p871_p11), %s1014_s3, 256, %s192_s6, [#allocation6], %s786_s8, %s786_s8, %s787_s9  }
  0x2a   : > { %s894_s15 = sadd.s32 1, %s782_s21   ;;  %s29_s16 = sadd.s32 1, %s778_s20 }
  0x2b   : > { %s26_s17 = ssub.s32 %s782_s21, %s894_s15  ;;  %p36_p1 = scmp.ne.s32.totalorder %s778_s20, %s774_s19 }
  0x2c   : > { %p27_p2 = scmp.eq.s32.totalorder %s26_s17, 0  ;;  %p37_p6 = scmp.eq.s32.totalorder %s782_s21, 0 }
  0x2d   : > { %p1025_p12 = scmp.eq.s32.totalorder %s843_s22, 1  ;;  %p586_p7 = scmp.lt.s32.totalorder %s782_s21, 2 }
  0x2e   : > { %s910_s27 = scalar_select %p27_p2, %s778_s20, %s29_s16  }
  0x2f   : > { %p904_p3 = por %p1025_p12, %p36_p1  ;;  %p38_p9 = por %p37_p6, %p36_p1 }
  0x30   : > { %s208_s28 = sand.u32 1, %s778_s20   ;;  %s517_s30 = sshll.u32 %s782_s21, 6 }
  0x31   : > { %s1026_s23 = scalar_select %p904_p3, 1, 0 }
  0x32   : > { %s516_s29 = sshll.u32 %s208_s28, 2  ;;  %s917_s8 = scalar_lea.hbm %s1011_s0, %s517_s30 }
  0x33   : > { %s212_s9 = scalar_lea.vmem [#allocation2], %s516_s29  ;;  %p919_p11 = pnand %p586_p7, %p38_p9 }
  0x34   : > { %s219_s10 = sshll.u32 %s212_s9, 4  ;;  %s209_s12 = scalar_lea.sflag [#allocation3], %s208_s28  ;;  %s220_s10 = int_to_ptr.vmem [resolvable:$true] %s219_s10 }
  0x35   : > { %s686_s13 = scalar_lea.hbm %s917_s8, 64  ;;  %p688_p0 = pneg %p919_p11 }
  0x36   : > { %p687_p13 = scmp.ne.s32.totalorder %s917_s8, %s686_s13  ;;  %s691_s17 = scalar_lea.hbm %s1011_s0, 128 }
  0x37   : > { %p692_p1 = scmp.lt.s32.totalorder %s917_s8, %s1011_s0  ;;  %p693_p2 = scmp.lt.s32.totalorder %s691_s17, %s686_s13 }
  0x38   : > { %p689_p5 = pnand %p688_p0, %p687_p13 }
  0x39   : > { %p694_p6 = por %p693_p2, %p692_p1 }
  0x3a   : > { %p690_p10 = pneg %p689_p5 }
  0x3c   : > { %p695_p12 = pnand %p694_p6, %p690_p10 }
  0x3e   : > { %698 = shalt.err (!%p695_p12)
}
  0x3f   : > { %s699_s6 = scalar_lea.vmem %s220_s10, 64  ;;  %s788_s28 = smov [#allocation2]  }
  0x40   : > { %p700_p7 = scmp.ne.s32.totalorder %s220_s10, %s699_s6  ;;  %s704_s7 = sshll.u32 %s788_s28, 4  ;;  %s705_s7 = int_to_ptr.vmem [resolvable:$false] %s704_s7 }
  0x41   : > { %s706_s9 = scalar_lea.vmem %s705_s7, 128  ;;  %p707_p13 = scmp.lt.s32.totalorder %s220_s10, %s705_s7 }
  0x42   : > { %p702_p9 = pnand %p700_p7, %p688_p0  ;;  %p708_p5 = scmp.lt.s32.totalorder %s706_s9, %s699_s6 }
  0x44   : > { %p703_p3 = pneg %p702_p9  ;;  %p709_p4 = por %p708_p5, %p707_p13 }
  0x46   : > { %p710_p8 = pnand %p709_p4, %p703_p3 }
  0x48   : > { %713 = shalt.err (!%p710_p8)
}
  0x49   : > { %579 = dma.hbm_to_vmem [thread:$0]  (!%p919_p11), %s917_s8, 64, %s220_s10, %s209_s12  }
  0x4a   : > { %p1028_p10 = scmp.ne.s32.totalorder %s1023_s26, 0 }
  0x4b   : > { %s940_s13 = sand.u32 (!%p1028_p10), 1, %s774_s19   ;;  %p1029_p4 = scmp.ne.s32.totalorder (!%p1028_p10), %s1021_s24, 0 }
  0x4c   : > { %228 = sbr.rel (%p1028_p10) target bundleno = 517 (0x205), region = 40  ;;  %s519_s14 = sshll.u32 (!%p1028_p10), %s940_s13, 2 }
  0x4d   : > { %s231_s16 = scalar_lea.sflag (!%p1028_p10), [#allocation3], %s940_s13  ;;  %s234_s17 = scalar_lea.vmem (!%p1028_p10), [#allocation2], %s519_s14 }
  0x51   : > { %757 = dma.done.wait (%p1029_p4), %s231_s16, 64  }
  0x52   : > { %759 = vsyncadd (%p1029_p4), %s231_s16, 4294967232  ;;  %p1030_p8 = scmp.eq.s32.totalorder %s843_s22, 0 }
  0x54   : > { %761 = dma.done.wait (%p1030_p8), [#allocation6], 512   ;;  %p1031_p3 = pmov %p1030_p8 }
  0x55   : > { %v789_v0 = vmov 0.0   ;;  %vm790_vm0 = vmmov 0   ;;  %v628_v1 = vld [vmem:[#allocation5 + $0x8] sm:$0xff]   ;;  %v629_v2 = vld [vmem:[#allocation5] sm:$0xff]   ;;  %v270_v3 = vld [vmem:[%s234_s17] sm:$0xf] }
  0x56   : > { %763 = vsyncadd (%p1031_p3), [#allocation6], 4294966784  ;;  %541 = vmatprep.subr.bf16.mxu0 %v789_v0  ;;  %545 = vmatprep.mubr.msk.bf16.mxu0 %vm790_vm0, %v789_v0  ;;  %vm294_vm1 = vcmask 261120   ;;  %v630_v4 = vld [vmem:[#allocation7 + $0x8] sm:$0xff]   ;;  %v631_v5 = vld [vmem:[#allocation7] sm:$0xff]   ;;  %s532_s11 = sshll.u32 %s843_s22, 6 }
  0x57   : > { %549 = vmatprep.subr.bf16.mxu1 %v789_v0  ;;  %553 = vmatprep.mubr.msk.bf16.mxu1 %vm790_vm0, %v789_v0  ;;  %v523_v6 = vld [vmem:[%s1013_s2] ss:$0 sm:$0xff]  ;;  %s268_s12 = scalar_lea.vmem [#allocation8], %s519_s14  ;;  %s968_s28 = scalar_lea.hbm %s1016_s5, %s532_s11 }
  0x58   : > { %542 = vmatpush3.bf16.msra.mxu0 %v628_v1  ;;  %550 = vmatpush3.bf16.msra.mxu1 %v630_v4  ;;  %v527_v14 = vld [vmem:[%s1015_s4] ss:$0 sm:$0xff]  ;;  %s422_s30 = sshll.u32 %s268_s12, 4  ;;  %s409_s22 = scalar_lea.sflag [#allocation4], %s940_s13  ;;  %s970_s30 = int_to_ptr.vmem [resolvable:$true] %s422_s30 }
  0x59   : > { %543 = vmatprep.subr.bf16.mxu0 %v789_v0  ;;  %551 = vmatprep.subr.bf16.mxu1 %v789_v0  ;;  %s714_s7 = scalar_lea.vmem %s970_s30, 64  ;;  %p1032_p0 = scmp.ne.s32.totalorder %s1026_s23, 0 }
  0x5a   : > { %p715_p11 = scmp.ne.s32.totalorder %s970_s30, %s714_s7  ;;  %s791_s9 = smov [#allocation8]  }
  0x5b   : > { %s718_s14 = sshll.u32 %s791_s9, 4  ;;  %s719_s14 = int_to_ptr.vmem [resolvable:$false] %s718_s14 }
  0x5c   : > { %544 = vmatpush3.bf16.msra.mxu0 %v629_v2  ;;  %552 = vmatpush3.bf16.msra.mxu1 %v631_v5  ;;  %p716_p1 = pnand %p715_p11, %p1032_p0  ;;  %s720_s16 = scalar_lea.vmem %s719_s14, 128 }
  0x5d   : > { %p721_p6 = scmp.lt.s32.totalorder %s970_s30, %s719_s14  ;;  %p722_p12 = scmp.lt.s32.totalorder %s720_s16, %s714_s7 }
  0x5e   : > { %p717_p2 = pneg %p716_p1 }
  0x5f   : > { %546 = vmatmul.mubr.msk.bf16.vlgmr.msra.gmra.mxu0 %vm294_vm1, %v270_v3  ;;  %p723_p7 = por %p722_p12, %p721_p6 }
  0x61   : > { %p724_p9 = pnand %p723_p7, %p717_p2 }
 0x11f   : > { %v332_v7 = vpop.f32.mrf.mxu0 }
 0x120   : > { %v333_v8 = vadd.f32 %v523_v6, %v332_v7 }
 0x121   : > { %v547_v9 = vpop.f32.mrf.mxu0 }
 0x122   : > { %632 = vtanh.f32 %v333_v8 }
 0x123   : > { %v335_v10 = vpop.f32.mrf.mxu0 }
 0x125   : > { %v548_v11 = vpop.f32.mrf.mxu0 }
 0x12f   : > { %v633_v12 = vpop.eup %632 }
 0x130   : > { %v339_v13 = vpack.c.bf16 %v633_v12, %v633_v12 }
 0x132   : > { %554 = vmatmul.mubr.msk.bf16.vlgmr.msra.gmra.mxu1 %vm294_vm1, %v339_v13 }
 0x1f2   : > { %v400_v15 = vpop.f32.mrf.mxu1 }
 0x1f3   : > { %v401_v16 = vadd.f32 %v527_v14, %v400_v15 }
 0x1f4   : > { %v555_v17 = vpop.f32.mrf.mxu1 }
 0x1f5   : > { %v406_v18 = vpack.c.bf16 %v401_v16, %v401_v16 }
 0x1f6   : > { %v403_v19 = vpop.f32.mrf.mxu1 }
 0x1f7   : > { %407 = vst [vmem:[%s268_s12] sm:$0xf] %v406_v18 }
 0x1f8   : > { %v556_v20 = vpop.f32.mrf.mxu1 }
 0x1f9   : > { %727 = shalt.err (!%p724_p9)
}
 0x1fa   : > { %s728_s17 = scalar_lea.hbm %s968_s28, 64  ;;  %s732_s26 = scalar_lea.hbm %s1016_s5, 128 }
 0x1fb   : > { %p729_p13 = scmp.ne.s32.totalorder %s968_s28, %s728_s17  ;;  %p733_p4 = scmp.lt.s32.totalorder %s968_s28, %s1016_s5 }
 0x1fc   : > { %p734_p8 = scmp.lt.s32.totalorder %s732_s26, %s728_s17 }
 0x1fd   : > { %p730_p5 = pnand %p729_p13, %p1032_p0 }
 0x1fe   : > { %p735_p3 = por %p734_p8, %p733_p4 }
 0x1ff   : > { %p731_p10 = pneg %p730_p5 }
 0x201   : > { %p736_p11 = pnand %p735_p3, %p731_p10 }
 0x203   : > { %739 = shalt.err (!%p736_p11)
}
 0x204   : > { %567 = dma.vmem_to_hbm [thread:$0]  (%p1032_p0), %s970_s30, 64, %s968_s28, %s409_s22  }
 0x205 PF: > { %s434_s11 = sand.u32 1, %s770_s18   ;;  %p1033_p1 = scmp.ne.s32.totalorder %s1022_s25, 0 }
 0x206   : > { %p1034_p2 = scmp.ge.s32.totalorder %s782_s21, 2  ;;  %s435_s12 = scalar_lea.sflag [#allocation4], %s434_s11 }
 0x208   : > { %p581_p6 = pnand %p1034_p2, %p1033_p1 }
 0x20a   : > { %p582_p12 = pneg %p581_p6 }
 0x20c   : > { %765 = dma.done.wait (%p582_p12), %s435_s12, 64  }
 0x20d   : > { %767 = vsyncadd (%p582_p12), %s435_s12, 4294967232  ;;  %p19_p7 = scmp.ge.s32.totalorder %s894_s15, 4   ;;  %s1035_s18 = smov %s774_s19 }
 0x20e   : > { %s1036_s19 = smov %s778_s20  ;;  %s1037_s20 = smov %s910_s27 }
 0x20f   : > { %s1038_s21 = smov %s894_s15  ;;  %21 = sbr.rel (!%p19_p7) target bundleno = 6 (0x6), region = 93 }
 0x214   :  { %440 = vsyncpa [#allocation3], 1 }
 0x215   :  { %442 = vsyncpa [#allocation3 + $0x1], 1 }
 0x216   :  { %443 = vsyncpa [#allocation6], 1 }
 0x217   :  { %444 = vsyncpa [#allocation4], 1 }
 0x218   :  { %446 = vsyncpa [#allocation4 + $0x1], 1 }

</bundles_post_ra>
